<compile_context>
chip_gen: v6e
topology: v6e:2x2x1
jax: 0.10.0
libtpu: 0.0.40
codegen_flags: <defaults>
</compile_context>

<pallas_src>
import math

import jax
import jax.numpy as jnp
from jax.experimental import pallas as pl
from jax.experimental.pallas import tpu as pltpu


_SQRT_HALF = 0.7071067811865476  # 1 / sqrt(2)
_LN_EPS = 1e-12


def _cdiv(a, b):
    return -(-a // b)


def _round_up(x, m):
    return (x + m - 1) // m * m


def _sublane(dtype):
    # packed sublane height: 8 for f32, 16 for bf16, 32 for int8/fp8
    return max(8, 32 // jnp.dtype(dtype).itemsize)


def _vmem_budget_bytes():
    cap = 64 * 1024 * 1024
    try:
        cap = int(pltpu.get_tpu_info().vmem_capacity_bytes)
    except Exception:
        pass
    # Leave headroom for Mosaic internal scratch / uncounted temporaries.
    return int(cap * 0.85)


def _gelu_ln_epilogue(h, g_ref, beta_ref, out_dtype):
    """gelu -> LayerNorm(eps=1e-12) -> gamma/beta on an f32 (tm, H) block.

    Canonical gelu is 0.5*h*(1+erf(h/sqrt(2))).  The 0.5 is a uniform positive
    scale, so it cancels exactly inside LayerNorm (up to the 1e-12 eps) — it
    is dropped to save one full (tm, H) VPU multiply pass.  erf(h * 1/sqrt(2))
    avoids a per-element divide; rsqrt goes to the EUP slot.
    """
    # TODO(synk): tanh-approx gelu would move the transcendental to the EUP
    # slot entirely, but changes numerics vs. the erf reference.
    h = h * (1.0 + jax.lax.erf(h * jnp.float32(_SQRT_HALF)))

    # One-pass LayerNorm statistics (sum / sum-of-squares) over hidden dim.
    inv_h = jnp.float32(1.0 / h.shape[-1])
    s = jnp.sum(h, axis=-1, keepdims=True)
    ss = jnp.sum(h * h, axis=-1, keepdims=True)
    mean = s * inv_h
    var = jnp.maximum(ss * inv_h - mean * mean, 0.0)  # guard fp cancellation
    h_hat = (h - mean) * jax.lax.rsqrt(var + jnp.float32(_LN_EPS))

    if out_dtype == jnp.bfloat16:
        # Final scale/shift on the bf16 VALU (v6e/v7x) — epilogue is VALU-bound.
        y = (h_hat.astype(jnp.bfloat16) * g_ref[...].astype(jnp.bfloat16)
             + beta_ref[...].astype(jnp.bfloat16))
    else:
        y = (h_hat * g_ref[...].astype(jnp.float32)
             + beta_ref[...].astype(jnp.float32))
    return y.astype(out_dtype)


def _transform_kernel(x_ref, w_ref, b_ref, g_ref, beta_ref, o_ref):
    # Native-dtype operands (bf16 takes the bf16 MXU path), f32 accumulation.
    h = jnp.dot(x_ref[...], w_ref[...], preferred_element_type=jnp.float32)
    h = h + b_ref[...].astype(jnp.float32)
    o_ref[...] = _gelu_ln_epilogue(h, g_ref, beta_ref, o_ref.dtype)


def _transform_kernel_ktiled(x_ref, w_ref, b_ref, g_ref, beta_ref, o_ref, acc_ref):
    k = pl.program_id(1)

    @pl.when(k == 0)
    def _():
        acc_ref[...] = jnp.zeros_like(acc_ref)

    acc_ref[...] += jnp.dot(x_ref[...], w_ref[...],
                            preferred_element_type=jnp.float32)

    @pl.when(k == pl.num_programs(1) - 1)
    def _():
        h = acc_ref[...] + b_ref[...].astype(jnp.float32)
        o_ref[...] = _gelu_ln_epilogue(h, g_ref, beta_ref, o_ref.dtype)


def bert_prediction_head_transform(x, weight, bias, gamma, beta, *,
                                   tm=512, tk=None, weight_transposed=False):
    """y = LayerNorm(gelu(x @ W^T + b)) * gamma + beta  (eps = 1e-12).

    x: [B, S, H]; weight: [H, H] in PyTorch nn.Linear layout (out x in), or
    already transposed to [in, out] if weight_transposed=True (preferred:
    pre-transpose once at parameter-load time to avoid an HBM round-trip per
    call).  tk: optional K tile (multiple of 128 dividing H) forcing the
    K-tiled reduction path; by default it is selected automatically when the
    resident weight does not fit the VMEM budget.
    """
    B, S, H = x.shape
    M = B * S

    in_isize = jnp.dtype(x.dtype).itemsize
    out_isize = in_isize
    w_isize = jnp.dtype(weight.dtype).itemsize
    sub = _sublane(x.dtype)
    budget = _vmem_budget_bytes()

    # --- Row tiling: minimal padding, and >= 2 grid steps whenever M allows
    # so both v7x TensorCores get work under the "parallel" grid axis.
    n_row_tiles = max(_cdiv(M, tm), 2 if M > sub else 1)
    tm_eff = _round_up(_cdiv(M, n_row_tiles), sub)
    m_pad = n_row_tiles * tm_eff

    x2 = x.reshape(M, H)
    if m_pad != M:
        # Padded zero rows are computed and discarded; numerically safe.
        x2 = jnp.pad(x2, ((0, m_pad - M), (0, 0)))

    w_t = weight if weight_transposed else weight.T   # [in, out] so x @ W^T
    b2 = bias.reshape(1, H)
    g2 = gamma.reshape(1, H)
    be2 = beta.reshape(1, H)

    def _work(k_blk, n_w_bufs, with_acc):
        return (2 * tm_eff * k_blk * in_isize           # x tiles, double-buffered
                + 2 * tm_eff * H * out_isize            # out tiles, double-buffered
                + n_w_bufs * k_blk * H * w_isize        # weight block(s)
                + (tm_eff * H * 4 if with_acc else 0)   # f32 accumulator scratch
                + 3 * tm_eff * H * 4                    # f32 epilogue temporaries
                + 6 * H * 4)                            # bias / gamma / beta

    use_k_tiling = tk is not None
    if not use_k_tiling and int(_work(H, 1, False) * 1.25) > budget and H % 128 == 0:
        # Resident weight + tiles would blow scoped VMEM (the v7x cliff): pick
        # the largest lane-aligned K tile dividing H that fits the budget.
        candidates = [c for c in range(H, 127, -128) if H % c == 0]
        tk = next((c for c in candidates
                   if int(_work(c, 2, True) * 1.25) <= budget), candidates[-1])
        use_k_tiling = True

    cost = pl.CostEstimate(
        flops=2 * m_pad * H * H,
        transcendentals=m_pad * H,
        bytes_accessed=(m_pad * H * (in_isize + out_isize)
                        + H * H * w_isize + 3 * H * 4),
    )

    if not use_k_tiling:
        work = _work(H, 1, False)
        vmem_limit = int(min(budget, max(int(work * 1.25), 32 * 1024 * 1024)))
        out = pl.pallas_call(
            _transform_kernel,
            out_shape=jax.ShapeDtypeStruct((m_pad, H), x.dtype),
            grid_spec=pltpu.PrefetchScalarGridSpec(
                num_scalar_prefetch=0,
                grid=(n_row_tiles,),
                in_specs=[
                    pl.BlockSpec((tm_eff, H), lambda i: (i, 0)),       # x rows
                    # Constant index_map + single buffering: DMA'd once, stays
                    # resident, and does not pay for a useless second buffer.
                    pl.BlockSpec((H, H), lambda i: (0, 0),
                                 pipeline_mode=pl.Buffered(1)),        # weight
                    pl.BlockSpec((1, H), lambda i: (0, 0),
                                 pipeline_mode=pl.Buffered(1)),        # bias
                    pl.BlockSpec((1, H), lambda i: (0, 0),
                                 pipeline_mode=pl.Buffered(1)),        # gamma
                    pl.BlockSpec((1, H), lambda i: (0, 0),
                                 pipeline_mode=pl.Buffered(1)),        # beta
                ],
                out_specs=pl.BlockSpec((tm_eff, H), lambda i: (i, 0)),
            ),
            compiler_params=pltpu.CompilerParams(
                dimension_semantics=("parallel",),
                vmem_limit_bytes=vmem_limit,
            ),
            cost_estimate=cost,
        )(x2, w_t, b2, g2, be2)
    else:
        assert H % tk == 0 and tk % 128 == 0, \
            "K tile must be a lane-aligned divisor of H"
        n_k_tiles = H // tk
        work = _work(tk, 2, True)
        vmem_limit = int(min(budget, max(int(work * 1.25), 32 * 1024 * 1024)))
        out = pl.pallas_call(
            _transform_kernel_ktiled,
            out_shape=jax.ShapeDtypeStruct((m_pad, H), x.dtype),
            grid_spec=pltpu.PrefetchScalarGridSpec(
                num_scalar_prefetch=0,
                grid=(n_row_tiles, n_k_tiles),
                in_specs=[
                    pl.BlockSpec((tm_eff, tk), lambda i, k: (i, k)),   # x
                    pl.BlockSpec((tk, H), lambda i, k: (k, 0)),        # weight
                    pl.BlockSpec((1, H), lambda i, k: (0, 0),
                                 pipeline_mode=pl.Buffered(1)),        # bias
                    pl.BlockSpec((1, H), lambda i, k: (0, 0),
                                 pipeline_mode=pl.Buffered(1)),        # gamma
                    pl.BlockSpec((1, H), lambda i, k: (0, 0),
                                 pipeline_mode=pl.Buffered(1)),        # beta
                ],
                out_specs=pl.BlockSpec((tm_eff, H), lambda i, k: (i, 0)),
                scratch_shapes=[pltpu.VMEM((tm_eff, H), jnp.float32)],
            ),
            compiler_params=pltpu.CompilerParams(
                dimension_semantics=("parallel", "arbitrary"),
                vmem_limit_bytes=vmem_limit,
            ),
            cost_estimate=cost,
        )(x2, w_t, b2, g2, be2)

    if m_pad != M:
        out = out[:M]
    return out.reshape(B, S, H)


def _reference(x, weight, bias, gamma, beta):
    h = jnp.einsum("bsh,oh->bso", x.astype(jnp.float32),
                   weight.astype(jnp.float32)) + bias
    h = 0.5 * h * (1.0 + jax.lax.erf(h / jnp.sqrt(2.0)))
    mean = jnp.mean(h, axis=-1, keepdims=True)
    var = jnp.mean((h - mean) ** 2, axis=-1, keepdims=True)
    return (h - mean) * jax.lax.rsqrt(var + 1e-12) * gamma + beta


if __name__ == "__main__":
    key = jax.random.PRNGKey(0)

    def _make(batch, seq, hidden, k):
        k_x, k_w, k_b, k_g, k_be = jax.random.split(k, 5)
        x = jax.random.normal(k_x, (batch, seq, hidden), dtype=jnp.float32)
        bound = 1.0 / math.sqrt(hidden)
        weight = jax.random.uniform(k_w, (hidden, hidden), minval=-bound,
                                    maxval=bound, dtype=jnp.float32)
        bias = jax.random.uniform(k_b, (hidden,), minval=-bound, maxval=bound,
                                  dtype=jnp.float32)
        gamma = (jnp.ones((hidden,), jnp.float32)
                 + 0.01 * jax.random.normal(k_g, (hidden,)))
        beta = 0.01 * jax.random.normal(k_be, (hidden,), dtype=jnp.float32)
        return x, weight, bias, gamma, beta

    k1, k2 = jax.random.split(key)

    # Case 1: small BERT-like shape (B=2, S=8, H=32), resident-weight path.
    # Small M still exercises the >= 2 grid-step rule (two 8-row tiles).
    x, w, b, g, be = _make(2, 8, 32, k1)
    y = jax.block_until_ready(bert_prediction_head_transform(x, w, b, g, be))
    y_ref = _reference(x, w, b, g, be)
    assert y.shape == x.shape
    assert jnp.allclose(y, y_ref, atol=1e-4, rtol=1e-4), "resident path mismatch"

    # Case 2: forced K-tiled fallback (tk=128, H=256, odd M=46 so the
    # minimal-pad row tiling pads 2 rows), with a pre-transposed weight.
    x, w, b, g, be = _make(2, 23, 256, k2)
    y = jax.block_until_ready(
        bert_prediction_head_transform(x, w.T, b, g, be, tk=128,
                                       weight_transposed=True))
    y_ref = _reference(x, w, b, g, be)
    assert y.shape == x.shape
    assert jnp.allclose(y, y_ref, atol=1e-4, rtol=1e-4), "k-tiled path mismatch"

    print("KERNEL_OK")
</pallas_src>

<mosaic_0001>
module attributes {stable_mosaic.version = 11 : i64} {
  func.func @_transform_kernel(%arg0: i32, %arg1: memref<8x32xf32, #tpu.memory_space<vmem>>, %arg2: memref<32x32xf32, #tpu.memory_space<vmem>>, %arg3: memref<1x32xf32, #tpu.memory_space<vmem>>, %arg4: memref<1x32xf32, #tpu.memory_space<vmem>>, %arg5: memref<1x32xf32, #tpu.memory_space<vmem>>, %arg6: memref<8x32xf32, #tpu.memory_space<vmem>>) attributes {dimension_semantics = [#tpu.dimension_semantics<parallel>], iteration_bounds = array<i64: 2>, scalar_prefetch = 0 : i64, scratch_operands = 0 : i64, tpu.core_type = #tpu.core_type<tc>, window_params = [{transform_indices = @transform_0, window_bounds = array<i64: 8, 32>}, {pipeline_mode = #tpu.pipeline_mode<synchronous>, transform_indices = @transform_1, window_bounds = array<i64: 32, 32>}, {pipeline_mode = #tpu.pipeline_mode<synchronous>, transform_indices = @transform_2, window_bounds = array<i64: 1, 32>}, {pipeline_mode = #tpu.pipeline_mode<synchronous>, transform_indices = @transform_3, window_bounds = array<i64: 1, 32>}, {pipeline_mode = #tpu.pipeline_mode<synchronous>, transform_indices = @transform_4, window_bounds = array<i64: 1, 32>}, {transform_indices = @transform_5, window_bounds = array<i64: 8, 32>}]} {
    %c0 = arith.constant 0 : index
    %c0_0 = arith.constant 0 : index
    %0 = vector.load %arg1[%c0, %c0_0] : memref<8x32xf32, #tpu.memory_space<vmem>>, vector<8x32xf32>
    %c0_1 = arith.constant 0 : index
    %c0_2 = arith.constant 0 : index
    %1 = vector.load %arg2[%c0_1, %c0_2] : memref<32x32xf32, #tpu.memory_space<vmem>>, vector<32x32xf32>
    %cst = arith.constant dense<0.000000e+00> : vector<8x32xf32>
    %2 = tpu.matmul %0, %1, %cst {dimension_numbers = #tpu.dot_dimension_numbers<[1], [0], [0], [1], [0, 0, 1, 1], [], []>} : vector<8x32xf32>, vector<32x32xf32>, vector<8x32xf32> -> vector<8x32xf32>
    %c0_3 = arith.constant 0 : index
    %c0_4 = arith.constant 0 : index
    %3 = vector.load %arg3[%c0_3, %c0_4] : memref<1x32xf32, #tpu.memory_space<vmem>>, vector<1x32xf32>
    %4 = vector.broadcast %3 : vector<1x32xf32> to vector<8x32xf32>
    %5 = arith.addf %2, %4 : vector<8x32xf32>
    %cst_5 = arith.constant 0.707106769 : f32
    %6 = vector.broadcast %cst_5 : f32 to vector<8x32xf32>
    %7 = arith.mulf %5, %6 : vector<8x32xf32>
    %8 = math.erf %7 : vector<8x32xf32>
    %cst_6 = arith.constant 1.000000e+00 : f32
    %9 = vector.broadcast %cst_6 : f32 to vector<8x32xf32>
    %10 = arith.addf %9, %8 : vector<8x32xf32>
    %11 = arith.mulf %5, %10 : vector<8x32xf32>
    %cst_7 = arith.constant dense<0.000000e+00> : vector<8xf32>
    %12 = vector.multi_reduction <add>, %11, %cst_7 [1] : vector<8x32xf32> to vector<8xf32>
    %13 = vector.shape_cast %12 : vector<8xf32> to vector<8x1xf32>
    %14 = arith.mulf %11, %11 : vector<8x32xf32>
    %cst_8 = arith.constant dense<0.000000e+00> : vector<8xf32>
    %15 = vector.multi_reduction <add>, %14, %cst_8 [1] : vector<8x32xf32> to vector<8xf32>
    %16 = vector.shape_cast %15 : vector<8xf32> to vector<8x1xf32>
    %cst_9 = arith.constant 3.125000e-02 : f32
    %17 = vector.broadcast %cst_9 : f32 to vector<8x1xf32>
    %18 = arith.mulf %13, %17 : vector<8x1xf32>
    %cst_10 = arith.constant 3.125000e-02 : f32
    %19 = vector.broadcast %cst_10 : f32 to vector<8x1xf32>
    %20 = arith.mulf %16, %19 : vector<8x1xf32>
    %21 = arith.mulf %18, %18 : vector<8x1xf32>
    %22 = arith.subf %20, %21 : vector<8x1xf32>
    %cst_11 = arith.constant 0.000000e+00 : f32
    %23 = vector.broadcast %cst_11 : f32 to vector<8x1xf32>
    %24 = arith.maximumf %22, %23 : vector<8x1xf32>
    %25 = vector.broadcast %18 : vector<8x1xf32> to vector<8x32xf32>
    %26 = arith.subf %11, %25 : vector<8x32xf32>
    %cst_12 = arith.constant 9.99999996E-13 : f32
    %27 = vector.broadcast %cst_12 : f32 to vector<8x1xf32>
    %28 = arith.addf %24, %27 : vector<8x1xf32>
    %29 = math.rsqrt %28 : vector<8x1xf32>
    %30 = vector.broadcast %29 : vector<8x1xf32> to vector<8x32xf32>
    %31 = arith.mulf %26, %30 : vector<8x32xf32>
    %c0_13 = arith.constant 0 : index
    %c0_14 = arith.constant 0 : index
    %32 = vector.load %arg4[%c0_13, %c0_14] : memref<1x32xf32, #tpu.memory_space<vmem>>, vector<1x32xf32>
    %33 = vector.broadcast %32 : vector<1x32xf32> to vector<8x32xf32>
    %34 = arith.mulf %31, %33 : vector<8x32xf32>
    %c0_15 = arith.constant 0 : index
    %c0_16 = arith.constant 0 : index
    %35 = vector.load %arg5[%c0_15, %c0_16] : memref<1x32xf32, #tpu.memory_space<vmem>>, vector<1x32xf32>
    %36 = vector.broadcast %35 : vector<1x32xf32> to vector<8x32xf32>
    %37 = arith.addf %34, %36 : vector<8x32xf32>
    %c0_17 = arith.constant 0 : index
    %c0_18 = arith.constant 0 : index
    %38 = vector.load %arg6[%c0_17, %c0_18] : memref<8x32xf32, #tpu.memory_space<vmem>>, vector<8x32xf32>
    tpu.vector_store %arg6[%c0_17, %c0_18], %37 {strides = array<i32>} : memref<8x32xf32, #tpu.memory_space<vmem>>, vector<8x32xf32>,
    return
  }
  func.func @transform_0(%arg0: i32) -> (i32, i32) {
    %c0_i32 = arith.constant 0 : i32
    %c0_i32_0 = arith.constant 0 : i32
    return %arg0, %c0_i32 : i32, i32
  }
  func.func @transform_1(%arg0: i32) -> (i32, i32) {
    %c0_i32 = arith.constant 0 : i32
    %c0_i32_0 = arith.constant 0 : i32
    %c0_i32_1 = arith.constant 0 : i32
    return %c0_i32, %c0_i32_0 : i32, i32
  }
  func.func @transform_2(%arg0: i32) -> (i32, i32) {
    %c0_i32 = arith.constant 0 : i32
    %c0_i32_0 = arith.constant 0 : i32
    %c0_i32_1 = arith.constant 0 : i32
    return %c0_i32, %c0_i32_0 : i32, i32
  }
  func.func @transform_3(%arg0: i32) -> (i32, i32) {
    %c0_i32 = arith.constant 0 : i32
    %c0_i32_0 = arith.constant 0 : i32
    %c0_i32_1 = arith.constant 0 : i32
    return %c0_i32, %c0_i32_0 : i32, i32
  }
  func.func @transform_4(%arg0: i32) -> (i32, i32) {
    %c0_i32 = arith.constant 0 : i32
    %c0_i32_0 = arith.constant 0 : i32
    %c0_i32_1 = arith.constant 0 : i32
    return %c0_i32, %c0_i32_0 : i32, i32
  }
  func.func @transform_5(%arg0: i32) -> (i32, i32) {
    %c0_i32 = arith.constant 0 : i32
    %c0_i32_0 = arith.constant 0 : i32
    return %arg0, %c0_i32 : i32, i32
  }
}

</mosaic_0001>

<bundles_post_ra>
// kernel: tpu_custom_call.1
= control target key start
LH: loop header
LB: loop body
LE: loop exit
PB: predicated region body
PF: predicated region fallthrough
CT: control target
= control target key end

     0   :  { %10 = vsyncpa [#allocation3], 0  ;;  %s903_s0 = inlined_call_operand.hbm [shape: f32[16,32], index: 0, kind: input, shape index: {}]   ;;  %s904_s1 = inlined_call_operand.hbm [shape: f32[32,32], index: 1, kind: input, shape index: {}]   ;;  %s905_s2 = inlined_call_operand.vmem [shape: f32[1,32], index: 2, kind: input, shape index: {}]   ;;  %s906_s3 = inlined_call_operand.vmem [shape: f32[1,32], index: 3, kind: input, shape index: {}]   ;;  %s907_s4 = inlined_call_operand.vmem [shape: f32[1,32], index: 4, kind: input, shape index: {}]   ;;  %s908_s5 = inlined_call_operand.hbm [shape: f32[16,32], index: 5, kind: output, shape index: {}]  }
   0x1   :  { %12 = vsyncpa [#allocation3 + $0x1], 0 }
   0x2   :  { %13 = vsyncpa [#allocation6], 0 }
   0x3   :  { %14 = vsyncpa [#allocation4], 0 }
   0x4   :  { %16 = vsyncpa [#allocation4 + $0x1], 0  ;;  %s732_s18 = smov 0   ;;  %s734_s19 = smov 0  }
   0x5   :  { %s736_s20 = smov 0   ;;  %s738_s21 = smov 0  }
   0x6 LB: > { %s753_s22 = sadd.s32 4294967295, %s693_s21   ;;  %s472_s23 = sadd.s32 4294967294, %s693_s21   ;;  %s693_s21 = sphi %s738_s21, %s930_s21   ;;  %s689_s20 = sphi %s736_s20, %s929_s20   ;;  %s685_s19 = sphi %s734_s19, %s928_s19   ;;  %s681_s18 = sphi %s732_s18, %s927_s18  }
   0x7   : > { %p42_p0 = scmp.ne.s32.totalorder %s685_s19, %s681_s18  ;;  %p909_p1 = scmp.eq.s32.totalorder %s753_s22, 0 }
   0x8   : > { %p156_p3 = scmp.eq.s32.totalorder %s472_s23, 1  ;;  %p473_p5 = scmp.ge.s32.totalorder %s693_s21, 1 }
   0x9   : > { %p762_p4 = por %p909_p1, %p42_p0  ;;  %p163_p7 = scmp.lt.s32.totalorder %s693_s21, 3 }
   0xa   : > { %p767_p6 = por %p156_p3, %p42_p0  ;;  %s695_s27 = smov [#allocation5]  }
   0xb   : > { %s913_s24 = scalar_select %p762_p4, 1, 0 }
   0xc   : > { %s914_s25 = scalar_select %p767_p6, 1, 0 }
   0xd   : > { %p772_p8 = pnand %p473_p5, %p163_p7  ;;  %s175_s28 = sshll.u32 %s695_s27, 4  ;;  %s176_s28 = int_to_ptr.vmem [resolvable:$true] %s175_s28 }
   0xe   : > { %s786_s30 = sadd.s32 1, %s693_s21   ;;  %s29_s6 = sadd.s32 1, %s689_s20 }
   0xf   : > { %s915_s26 = scalar_select %p772_p8, 1, 0 }
  0x10   : > { %p514_p9 = pneg %p772_p8  ;;  %s26_s7 = ssub.s32 %s693_s21, %s786_s30 }
  0x11   : > { %s582_s8 = scalar_lea.vmem %s176_s28, 512  ;;  %p590_p5 = scmp.lt.s32.totalorder %s176_s28, %s176_s28 }
  0x12   : > { %p781_p11 = pnand %p514_p9, %p909_p1  ;;  %p583_p13 = scmp.ne.s32.totalorder %s176_s28, %s582_s8 }
  0x13   : > { %p591_p7 = scmp.lt.s32.totalorder %s582_s8, %s582_s8 }
  0x14   : > { %p573_p12 = pneg %p781_p11 }
  0x15   : > { %p592_p10 = por %p591_p7, %p590_p5 }
  0x16   : > { %p585_p0 = pnand %p583_p13, %p573_p12 }
  0x18   : > { %p586_p3 = pneg %p585_p0 }
  0x1a   : > { %p593_p2 = pnand %p592_p10, %p586_p3 }
  0x1c   : > { %596 = shalt.err (!%p593_p2)
}
  0x1d   : > { %s696_s9 = smov 128   ;;  %s697_s10 = smov 8  }
  0x1e   : > { %517 = dma.hbm_to_vmem [thread:$0]  (!%p781_p11), %s904_s1, 512, %s176_s28, [#allocation6], %s696_s9, %s696_s9, %s697_s10  }
  0x1f   : > { %p27_p9 = scmp.eq.s32.totalorder %s26_s7, 0  ;;  %p36_p12 = scmp.ne.s32.totalorder %s689_s20, %s685_s19 }
  0x20   : > { %p37_p10 = scmp.eq.s32.totalorder %s693_s21, 0  ;;  %p527_p2 = scmp.lt.s32.totalorder %s693_s21, 2 }
  0x21   : > { %s803_s13 = scalar_select %p27_p9, %s689_s20, %s29_s6  }
  0x22   : > { %p38_p13 = por %p37_p10, %p36_p12  ;;  %p917_p0 = scmp.eq.s32.totalorder %s753_s22, 1 }
  0x23   : > { %s198_s15 = sand.u32 1, %s689_s20   ;;  %s477_s16 = sshll.u32 %s693_s21, 7 }
  0x24   : > { %p807_p3 = por %p917_p0, %p36_p12  ;;  %s476_s17 = sshll.u32 %s198_s15, 3 }
  0x25   : > { %s816_s29 = scalar_lea.hbm %s903_s0, %s477_s16  ;;  %s202_s28 = scalar_lea.vmem [#allocation2], %s476_s17 }
  0x26   : > { %s918_s14 = scalar_select %p807_p3, 1, 0 }
  0x27   : > { %s209_s6 = sshll.u32 %s202_s28, 4  ;;  %p818_p11 = pnand %p527_p2, %p38_p13  ;;  %s210_s6 = int_to_ptr.vmem [resolvable:$true] %s209_s6 }
  0x28   : > { %s199_s8 = scalar_lea.sflag [#allocation3], %s198_s15  ;;  %s597_s9 = scalar_lea.hbm %s816_s29, 128 }
  0x29   : > { %p598_p5 = scmp.ne.s32.totalorder %s816_s29, %s597_s9  ;;  %p599_p7 = pneg %p818_p11 }
  0x2a   : > { %s602_s12 = scalar_lea.hbm %s903_s0, 256  ;;  %p603_p10 = scmp.lt.s32.totalorder %s816_s29, %s903_s0 }
  0x2b   : > { %p600_p9 = pnand %p599_p7, %p598_p5  ;;  %p604_p2 = scmp.lt.s32.totalorder %s602_s12, %s597_s9 }
  0x2d   : > { %p601_p12 = pneg %p600_p9  ;;  %p605_p13 = por %p604_p2, %p603_p10 }
  0x2f   : > { %p606_p0 = pnand %p605_p13, %p601_p12 }
  0x31   : > { %609 = shalt.err (!%p606_p0)
}
  0x32   : > { %s610_s23 = scalar_lea.vmem %s210_s6, 128  ;;  %s698_s15 = smov [#allocation2]  }
  0x33   : > { %p611_p1 = scmp.ne.s32.totalorder %s210_s6, %s610_s23  ;;  %s615_s27 = sshll.u32 %s698_s15, 4  ;;  %s616_s27 = int_to_ptr.vmem [resolvable:$false] %s615_s27 }
  0x34   : > { %s617_s28 = scalar_lea.vmem %s616_s27, 256  ;;  %p618_p5 = scmp.lt.s32.totalorder %s210_s6, %s616_s27 }
  0x35   : > { %p613_p6 = pnand %p611_p1, %p599_p7  ;;  %p619_p9 = scmp.lt.s32.totalorder %s617_s28, %s610_s23 }
  0x37   : > { %p614_p3 = pneg %p613_p6  ;;  %p620_p4 = por %p619_p9, %p618_p5 }
  0x39   : > { %p621_p8 = pnand %p620_p4, %p614_p3 }
  0x3b   : > { %624 = shalt.err (!%p621_p8)
}
  0x3c   : > { %521 = dma.hbm_to_vmem [thread:$0]  (!%p818_p11), %s816_s29, 128, %s210_s6, %s199_s8  }
  0x3d   : > { %p920_p12 = scmp.ne.s32.totalorder %s915_s26, 0 }
  0x3e   : > { %s839_s9 = sand.u32 (!%p920_p12), 1, %s685_s19   ;;  %p921_p1 = scmp.ne.s32.totalorder (!%p920_p12), %s913_s24, 0 }
  0x3f   : > { %218 = sbr.rel (%p920_p12) target bundleno = 480 (0x1e0), region = 40  ;;  %s479_s10 = sshll.u32 (!%p920_p12), %s839_s9, 3 }
  0x40   : > { %s221_s11 = scalar_lea.sflag (!%p920_p12), [#allocation3], %s839_s9  ;;  %s224_s12 = scalar_lea.vmem (!%p920_p12), [#allocation2], %s479_s10 }
  0x44   : > { %668 = dma.done.wait (%p921_p1), %s221_s11, 128  }
  0x45   : > { %670 = vsyncadd (%p921_p1), %s221_s11, 4294967168  ;;  %p922_p4 = scmp.eq.s32.totalorder %s753_s22, 0 }
  0x47   : > { %672 = dma.done.wait (%p922_p4), [#allocation6], 512   ;;  %p923_p6 = pmov %p922_p4 }
  0x48   : > { %v699_v0 = vmov 0.0   ;;  %vm700_vm0 = vmmov 0   ;;  %v259_v1 = vld [vmem:[#allocation5 + $0x18] sm:$0xff]  ;;  %v258_v2 = vld [vmem:[#allocation5 + $0x10] sm:$0xff]  ;;  %v257_v3 = vld [vmem:[#allocation5 + $0x8] sm:$0xff]  ;;  %vm267_vm1 = vcmask 261120  }
  0x49   : > { %674 = vsyncadd (%p923_p6), [#allocation6], 4294966784  ;;  %495 = vmatprep.subr.mxu0 %v699_v0  ;;  %503 = vmatprep.mubr.msk.f32.mxu0 %vm700_vm0, %v699_v0  ;;  %v256_v4 = vld [vmem:[#allocation5] sm:$0xff]  ;;  %v255_v5 = vld [vmem:[%s224_s12] sm:$0xff]  ;;  %s487_s16 = sshll.u32 %s753_s22, 7  ;;  %s254_s17 = scalar_lea.vmem [#allocation7], %s479_s10 }
  0x4a   : > { %496 = vmatpush3.msra.mxu0 %v259_v1  ;;  %v482_v6 = vld [vmem:[%s905_s2] ss:$0 sm:$0xff]  ;;  %s392_s23 = sshll.u32 %s254_s17, 4  ;;  %s390_s28 = scalar_lea.hbm %s908_s5, %s487_s16  ;;  %s393_s23 = int_to_ptr.vmem [resolvable:$true] %s392_s23 }
  0x4b   : > { %497 = vmatprep.subr.mxu0 %v699_v0  ;;  %v484_v27 = vld [vmem:[%s906_s3] ss:$0 sm:$0xff]  ;;  %s379_s11 = scalar_lea.sflag [#allocation4], %s839_s9  ;;  %s625_s12 = scalar_lea.vmem %s393_s23, 128 }
  0x4c   : > { %498 = vmatpush3.msra.mxu0 %v258_v2  ;;  %v485_v29 = vld [vmem:[%s907_s4] ss:$0 sm:$0xff]  ;;  %p626_p8 = scmp.ne.s32.totalorder %s393_s23, %s625_s12  ;;  %p924_p3 = scmp.ne.s32.totalorder %s918_s14, 0 }
  0x4d   : > { %499 = vmatprep.subr.mxu0 %v699_v0  ;;  %s701_s24 = smov [#allocation7]  }
  0x4e   : > { %500 = vmatpush3.msra.mxu0 %v257_v3  ;;  %p627_p11 = pnand %p626_p8, %p924_p3  ;;  %s629_s22 = sshll.u32 %s701_s24, 4  ;;  %s630_s22 = int_to_ptr.vmem [resolvable:$false] %s629_s22 }
  0x4f   : > { %501 = vmatprep.subr.mxu0 %v699_v0  ;;  %s631_s10 = scalar_lea.vmem %s630_s22, 256  ;;  %p632_p10 = scmp.lt.s32.totalorder %s393_s23, %s630_s22 }
  0x50   : > { %502 = vmatpush3.msra.mxu0 %v256_v4  ;;  %p628_p7 = pneg %p627_p11  ;;  %p633_p2 = scmp.lt.s32.totalorder %s631_s10, %s625_s12 }
  0x51   : > { %504 = vmatmul.mubr.msk.f32.vlgmr.msra.gmra.mxu0 %vm267_vm1, %v255_v5 }
  0x52   : > { %p634_p13 = por %p633_p2, %p632_p10 }
  0x54   : > { %p635_p0 = pnand %p634_p13, %p628_p7 }
 0x111   : > { %v337_v7 = vpop.f32.mrf.mxu0 }
 0x112   : > { %v338_v8 = vadd.f32 %v482_v6, %v337_v7 }
 0x113   : > { %v505_v9 = vpop.f32.mrf.mxu0 }
 0x114   : > { %v341_v10 = vmul.f32 0.70710677, %v338_v8 }
 0x116   : > { %567 = verf.f32 %v341_v10 }
 0x123   : > { %v568_v11 = vpop.eup %567 }
 0x124   : > { %v343_v12 = vadd.f32 1.0, %v568_v11 }
 0x126   : > { %v344_v13 = vmul.f32 %v343_v12, %v338_v8 }
 0x128   : > { %v345_v14 = vsel %vm267_vm1, %v344_v13, 0.0  ;;  %v348_v15 = vmul.f32 %v344_v13, %v344_v13 }
 0x129   : > { %346 = vadd.xlane.f32.xlu0 %v345_v14 }
 0x12a   : > { %v349_v16 = vsel %vm267_vm1, %v348_v15, 0.0 }
 0x12d   : > { %350 = vadd.xlane.f32.xlu0 %v349_v16 }
 0x1b2   : > { %v347_v17 = vpop.xlane.xlu0 %346 }
 0x1b3   : > { %v352_v18 = vmul.f32 0.03125, %v347_v17 }
 0x1b5   : > { %v354_v20 = vmul.f32 %v352_v18, %v352_v18  ;;  %v357_v25 = vsub.f32 %v344_v13, %v352_v18 }
 0x1b6   : > { %v351_v19 = vpop.xlane.xlu0 %350 }
 0x1b7   : > { %v353_v21 = vmul.f32 0.03125, %v351_v19 }
 0x1b9   : > { %v355_v22 = vsub.f32 %v353_v21, %v354_v20 }
 0x1bb   : > { %v356_v23 = vmax.f32 %v355_v22, 0.0 }
 0x1bd   : > { %v358_v24 = vadd.f32 1e-12, %v356_v23 }
 0x1bf   : > { %569 = vrsqrt.f32 %v358_v24 }
 0x1cc   : > { %v570_v26 = vpop.eup %569 }
 0x1cd   : > { %v360_v28 = vmul.f32 %v570_v26, %v357_v25 }
 0x1cf   : > { %v368_v30 = vmul.f32 %v484_v27, %v360_v28 }
 0x1d1   : > { %v376_v31 = vadd.f32 %v485_v29, %v368_v30 }
 0x1d3   : > { %377 = vst.msk [vmem:[%s254_s17] sm:$0xff] %vm267_vm1, %v376_v31 }
 0x1d4   : > { %638 = shalt.err (!%p635_p0)
}
 0x1d5   : > { %s639_s26 = scalar_lea.hbm %s390_s28, 128  ;;  %s643_s6 = scalar_lea.hbm %s908_s5, 256 }
 0x1d6   : > { %p640_p5 = scmp.ne.s32.totalorder %s390_s28, %s639_s26  ;;  %p644_p1 = scmp.lt.s32.totalorder %s390_s28, %s908_s5 }
 0x1d7   : > { %p645_p4 = scmp.lt.s32.totalorder %s643_s6, %s639_s26 }
 0x1d8   : > { %p641_p9 = pnand %p640_p5, %p924_p3 }
 0x1d9   : > { %p646_p6 = por %p645_p4, %p644_p1 }
 0x1da   : > { %p642_p12 = pneg %p641_p9 }
 0x1dc   : > { %p647_p8 = pnand %p646_p6, %p642_p12 }
 0x1de   : > { %650 = shalt.err (!%p647_p8)
}
 0x1df   : > { %512 = dma.vmem_to_hbm [thread:$0]  (%p924_p3), %s393_s23, 128, %s390_s28, %s379_s11  }
 0x1e0 PF: > { %s404_s16 = sand.u32 1, %s681_s18   ;;  %p925_p11 = scmp.ne.s32.totalorder %s914_s25, 0 }
 0x1e1   : > { %p926_p7 = scmp.ge.s32.totalorder %s693_s21, 2  ;;  %s405_s17 = scalar_lea.sflag [#allocation4], %s404_s16 }
 0x1e3   : > { %p523_p10 = pnand %p926_p7, %p925_p11 }
 0x1e5   : > { %p524_p2 = pneg %p523_p10 }
 0x1e7   : > { %676 = dma.done.wait (%p524_p2), %s405_s17, 128  }
 0x1e8   : > { %678 = vsyncadd (%p524_p2), %s405_s17, 4294967168  ;;  %p19_p13 = scmp.ge.s32.totalorder %s786_s30, 4   ;;  %s927_s18 = smov %s685_s19 }
 0x1e9   : > { %s928_s19 = smov %s689_s20  ;;  %s929_s20 = smov %s803_s13 }
 0x1ea   : > { %s930_s21 = smov %s786_s30  ;;  %21 = sbr.rel (!%p19_p13) target bundleno = 6 (0x6), region = 89 }
 0x1ef   :  { %410 = vsyncpa [#allocation3], 1 }
 0x1f0   :  { %412 = vsyncpa [#allocation3 + $0x1], 1 }
 0x1f1   :  { %413 = vsyncpa [#allocation6], 1 }
 0x1f2   :  { %414 = vsyncpa [#allocation4], 1 }
 0x1f3   :  { %416 = vsyncpa [#allocation4 + $0x1], 1 }

</bundles_post_ra>
